<compile_context>
chip_gen: v7x
topology: tpu7x:2x2x1
jax: 0.10.0
libtpu: 0.0.40
codegen_flags: <defaults>
</compile_context>

<pallas_src>
import jax
import jax.numpy as jnp
from jax.experimental import pallas as pl
from jax.experimental.pallas import tpu as pltpu


def _round_up(v, m):
    return ((v + m - 1) // m) * m


def _round_down(v, m):
    return (v // m) * m


def _vmem_capacity_bytes():
    # Generation-aware VMEM capacity (128 MiB on v5e/v6e, 64 MiB on v7x).
    try:
        return int(pltpu.get_tpu_info().vmem_capacity_bytes)
    except Exception:
        return 64 * 1024 * 1024  # conservative fallback (v7x physical size)


def _make_kernel(sub_rows, n_chunks, precision):
    def kernel(x_ref, w_ref, b_ref, o_ref):
        # x_ref: (tile_n, F) input row tile (pipelined)
        # w_ref: (8, F)      resident weights (row 0 = w, rows 1..7 zero)
        # b_ref: (1,)        f32 bias scalar in SMEM
        # o_ref: (1, tile_n) lane-dense output row block
        w = w_ref[...]
        b = b_ref[0]

        def chunk(r0):
            x = x_ref[pl.ds(r0, sub_rows), :]                  # (sub_rows, F)
            # MXU: (8, F) . (sub_rows, F)^T -> (8, sub_rows), f32 accumulate.
            z = jax.lax.dot_general(
                w, x,
                dimension_numbers=(((1,), (1,)), ((), ())),
                preferred_element_type=jnp.float32,
                precision=precision)
            zr = z[0:1, :] + b                                  # (1, sub_rows) f32
            o_ref[:, pl.ds(r0, sub_rows)] = (
                jax.nn.sigmoid(zr).astype(o_ref.dtype))

        if n_chunks == 1:
            chunk(0)
        else:
            def body(c, carry):
                chunk(pl.multiple_of(c * sub_rows, sub_rows))
                return carry
            jax.lax.fori_loop(0, n_chunks, body, 0)

    return kernel


def logistic_regression_forward(x, w, b, precision=None):
    """Forward pass: sigmoid(x @ w.T + b).

    x: (N, F) float32/bfloat16; w: (1, F) torch-Linear-style weight; b: (1,).
    Returns an (N, 1) array with x's dtype.
    """
    n, f = x.shape
    assert w.shape == (1, f), f"expected weight shape (1, {f}), got {w.shape}"
    itemsize = x.dtype.itemsize

    # Row granularity: 128 keeps lane-dense output blocks legal for every
    # grid size and is a multiple of the sublane packing of f32/bf16/int8.
    gran = 128
    n_rounded = _round_up(max(n, 1), gran)
    row_bytes = _round_up(f, 128) * itemsize          # VMEM bytes of one padded row

    # --- Tile sizing: large, generation-aware, >= 2 grid steps for megacore ---
    vmem_cap = _vmem_capacity_bytes()
    x_buf_budget = min(16 << 20, max(4 << 20, vmem_cap // 8))   # per x buffer (x2 for double-buffering)
    budget_rows = max(gran, _round_down(x_buf_budget // row_bytes, gran))
    tile_n = min(budget_rows, n_rounded)
    if n_rounded >= 2 * gran:
        # Keep >= 2 row tiles so v7x can shard across its two TensorCores;
        # prefer >= 4 tiles when tiles stay comfortably DMA-dominated.
        tile_n = min(tile_n, _round_up(pl.cdiv(n_rounded, 2), gran))
        four = _round_up(pl.cdiv(n_rounded, 4), gran)
        if four * row_bytes >= (2 << 20):
            tile_n = min(tile_n, four)

    # In-kernel row chunk (~1 MiB of x) keeps vector live ranges bounded.
    sub_rows = min(tile_n, max(gran, _round_down((1 << 20) // row_bytes, gran)))
    tile_n = max(sub_rows, _round_down(tile_n, sub_rows))
    n_chunks = tile_n // sub_rows

    num_tiles = pl.cdiv(n_rounded, tile_n)
    n_pad = num_tiles * tile_n

    # Resident weights padded to a full 8-sublane MXU LHS; f32 bias in SMEM.
    w8 = jnp.pad(w.astype(x.dtype), ((0, 7), (0, 0)))
    b_smem = jnp.asarray(b, dtype=jnp.float32).reshape(1)

    # Scoped-VMEM limit from the actual padded buffer sizes (+ headroom),
    # kept well inside the chip's physical VMEM.
    est = (2 * tile_n * row_bytes                        # double-buffered x tiles
           + 2 * 8 * _round_up(f, 128) * itemsize        # resident weight buffers
           + 2 * 8 * tile_n * itemsize                   # sublane-padded output rows
           + 8 * sub_rows * 4                            # matmul result registers/scratch
           + (1 << 20))                                  # margin
    vmem_limit = int(min(3 * vmem_cap // 4, max(32 << 20, 3 * est // 2)))

    out2d = pl.pallas_call(
        _make_kernel(sub_rows, n_chunks, precision),
        out_shape=jax.ShapeDtypeStruct((1, n_pad), x.dtype),
        grid_spec=pltpu.PrefetchScalarGridSpec(
            num_scalar_prefetch=0,
            grid=(num_tiles,),
            in_specs=[
                pl.BlockSpec((tile_n, f), lambda i: (i, 0)),         # x row tile (pipelined)
                pl.BlockSpec((8, f), lambda i: (0, 0)),              # weights, resident
                pl.BlockSpec(memory_space=pltpu.MemorySpace.SMEM),   # bias scalar in SMEM
            ],
            out_specs=pl.BlockSpec((1, tile_n), lambda i: (0, i)),   # lane-dense output rows
        ),
        compiler_params=pltpu.CompilerParams(
            dimension_semantics=("parallel",),   # megacore sharding on v7x
            vmem_limit_bytes=vmem_limit,
        ),
    )(x, w8, b_smem)

    # Padded / garbage rows (>= n) are dropped here; valid rows are untouched.
    return out2d.reshape(-1)[:n].reshape(n, 1)


def _reference(x, w, b):
    x32 = x.astype(jnp.float32)
    w32 = w.astype(jnp.float32)
    z = jnp.dot(x32, w32.T, precision="highest") + b.astype(jnp.float32)
    return jax.nn.sigmoid(z)


if __name__ == "__main__":
    key = jax.random.PRNGKey(0)
    kx, kw, kb, kx2, kw2, kb2, kx3, kw3, kb3 = jax.random.split(key, 9)

    # --- Small case matching the module's toy usage (single tile) -------------
    batch, num_param = 8, 32
    x = jax.random.normal(kx, (batch, num_param), dtype=jnp.float32)
    bound = 1.0 / jnp.sqrt(jnp.float32(num_param))
    w = jax.random.uniform(kw, (1, num_param), minval=-bound, maxval=bound,
                           dtype=jnp.float32)
    b = jax.random.uniform(kb, (1,), minval=-bound, maxval=bound, dtype=jnp.float32)

    pred = jax.block_until_ready(logistic_regression_forward(x, w, b))
    ref = _reference(x, w, b)
    assert pred.shape == (batch, 1)
    # Tolerance covers standard TPU MXU dot precision for f32 multiplicands.
    assert jnp.allclose(pred.astype(jnp.float32), ref, atol=1e-2), \
        "mismatch vs reference (small case)"

    # --- Larger, non-multiple-of-128 case: tiled, lane-dense, edge handling ---
    n2, f2 = 2000, 128
    x2 = jax.random.normal(kx2, (n2, f2), dtype=jnp.float32)
    bound2 = 1.0 / jnp.sqrt(jnp.float32(f2))
    w2 = jax.random.uniform(kw2, (1, f2), minval=-bound2, maxval=bound2,
                            dtype=jnp.float32)
    b2 = jax.random.uniform(kb2, (1,), minval=-bound2, maxval=bound2,
                            dtype=jnp.float32)

    pred2 = jax.block_until_ready(logistic_regression_forward(x2, w2, b2))
    ref2 = _reference(x2, w2, b2)
    assert pred2.shape == (n2, 1)
    assert jnp.allclose(pred2.astype(jnp.float32), ref2, atol=1e-2), \
        "mismatch vs reference (tiled f32 case)"

    # --- bf16 feed (bandwidth-optimal path), f32 accumulate in-kernel ---------
    n3, f3 = 1024, 256
    x3 = jax.random.normal(kx3, (n3, f3), dtype=jnp.bfloat16)
    bound3 = 1.0 / jnp.sqrt(jnp.float32(f3))
    w3 = jax.random.uniform(kw3, (1, f3), minval=-bound3, maxval=bound3,
                            dtype=jnp.float32).astype(jnp.bfloat16)
    b3 = jax.random.uniform(kb3, (1,), minval=-bound3, maxval=bound3,
                            dtype=jnp.float32)

    pred3 = jax.block_until_ready(logistic_regression_forward(x3, w3, b3))
    ref3 = _reference(x3, w3, b3)
    assert pred3.shape == (n3, 1)
    assert jnp.allclose(pred3.astype(jnp.float32), ref3, atol=2.5e-2), \
        "mismatch vs reference (bf16 case)"

    print("KERNEL_OK")
</pallas_src>

<mosaic_0001>
module attributes {stable_mosaic.version = 11 : i64} {
  func.func @kernel(%arg0: i32, %arg1: memref<128x32xf32, #tpu.memory_space<vmem>>, %arg2: memref<8x32xf32, #tpu.memory_space<vmem>>, %arg3: memref<1xf32, #tpu.memory_space<smem>>, %arg4: memref<1x128xf32, #tpu.memory_space<vmem>>) attributes {dimension_semantics = [#tpu.dimension_semantics<parallel>], iteration_bounds = array<i64: 1>, scalar_prefetch = 0 : i64, scratch_operands = 0 : i64, tpu.core_type = #tpu.core_type<tc>, window_params = [{transform_indices = @transform_0, window_bounds = array<i64: 128, 32>}, {pipeline_mode = #tpu.pipeline_mode<synchronous>, transform_indices = @transform_1, window_bounds = array<i64: 8, 32>}, {transform_indices = @transform_2, window_bounds = array<i64: 1>}, {transform_indices = @transform_3, window_bounds = array<i64: 1, 128>}]} {
    %c0 = arith.constant 0 : index
    %c0_0 = arith.constant 0 : index
    %0 = vector.load %arg2[%c0, %c0_0] : memref<8x32xf32, #tpu.memory_space<vmem>>, vector<8x32xf32>
    %c0_1 = arith.constant 0 : index
    %1 = memref.load %arg3[%c0_1] : memref<1xf32, #tpu.memory_space<smem>>
    %c0_2 = arith.constant 0 : index
    %c0_3 = arith.constant 0 : index
    %2 = vector.load %arg1[%c0_2, %c0_3] : memref<128x32xf32, #tpu.memory_space<vmem>>, vector<128x32xf32>
    %cst = arith.constant dense<0.000000e+00> : vector<8x128xf32>
    %3 = tpu.matmul %0, %2, %cst {dimension_numbers = #tpu.dot_dimension_numbers<[1], [1], [0], [0], [0, 0, 1, 0], [], []>} : vector<8x32xf32>, vector<128x32xf32>, vector<8x128xf32> -> vector<8x128xf32>
    %4 = vector.extract_strided_slice %3 {offsets = [0, 0], sizes = [1, 128], strides = [1, 1]} : vector<8x128xf32> to vector<1x128xf32>
    %5 = vector.broadcast %1 : f32 to vector<1x128xf32>
    %6 = arith.addf %4, %5 : vector<1x128xf32>
    %7 = arith.negf %6 : vector<1x128xf32>
    %8 = math.exp %7 : vector<1x128xf32>
    %cst_4 = arith.constant 1.000000e+00 : f32
    %9 = vector.broadcast %cst_4 : f32 to vector<1x128xf32>
    %10 = arith.addf %9, %8 : vector<1x128xf32>
    %11 = arith.divf %9, %10 : vector<1x128xf32>
    %c0_5 = arith.constant 0 : index
    %c0_6 = arith.constant 0 : index
    %12 = vector.load %arg4[%c0_5, %c0_6] : memref<1x128xf32, #tpu.memory_space<vmem>>, vector<1x128xf32>
    tpu.vector_store %arg4[%c0_5, %c0_6], %11 {strides = array<i32>} : memref<1x128xf32, #tpu.memory_space<vmem>>, vector<1x128xf32>,
    return
  }
  func.func @transform_0(%arg0: i32) -> (i32, i32) {
    %c0_i32 = arith.constant 0 : i32
    %c0_i32_0 = arith.constant 0 : i32
    return %arg0, %c0_i32 : i32, i32
  }
  func.func @transform_1(%arg0: i32) -> (i32, i32) {
    %c0_i32 = arith.constant 0 : i32
    %c0_i32_0 = arith.constant 0 : i32
    %c0_i32_1 = arith.constant 0 : i32
    return %c0_i32, %c0_i32_0 : i32, i32
  }
  func.func @transform_2(%arg0: i32) -> i32 {
    %c0_i32 = arith.constant 0 : i32
    %c0_i32_0 = arith.constant 0 : i32
    return %c0_i32 : i32
  }
  func.func @transform_3(%arg0: i32) -> (i32, i32) {
    %c0_i32 = arith.constant 0 : i32
    %c0_i32_0 = arith.constant 0 : i32
    return %c0_i32, %arg0 : i32, i32
  }
}

</mosaic_0001>

<bundles_post_ra>
// kernel: tpu_custom_call.1
= control target key start
LH: loop header
LB: loop body
LE: loop exit
PB: predicated region body
PF: predicated region fallthrough
CT: control target
= control target key end

     0   :  { %9 = vsyncpa [#allocation4], 0  ;;  %s483_s0 = inlined_call_operand.hbm [shape: f32[8,32], index: 0, kind: input, shape index: {}]   ;;  %s484_s1 = inlined_call_operand.hbm [shape: f32[8,32], index: 1, kind: input, shape index: {}]   ;;  %s485_s2 = inlined_call_operand.<no memory space> [shape: f32[1], index: 2, kind: input, shape index: {}]   ;;  %s486_s3 = inlined_call_operand.hbm [shape: f32[1,128], index: 3, kind: output, shape index: {}]  }
   0x1   :  { %10 = vsyncpa [#allocation7], 0 }
   0x2   :  { %11 = vsyncpa [#allocation5], 0 }
   0x3   :  { %16 = vsyncadd [#allocation4], 1920  ;;  %s393_s12 = smov [#allocation3]   ;;  %s321_s16 = scalar_lea.hbm %s483_s0, 128 }
   0x4   :  { %s17_s13 = sshll.u32 %s393_s12, 4  ;;  %p322_p0 = scmp.ne.s32.totalorder %s483_s0, %s321_s16  ;;  %s18_s13 = int_to_ptr.vmem [resolvable:$true] %s17_s13 }
   0x5   :  { %p325_p1 = scmp.lt.u32.totalorder %s321_s16, %s483_s0 }
   0x7   :  { %p327_p2 = pnand %p325_p1, %p322_p0 }
   0x9   :  { %330 = shalt.err (!%p327_p2)
}
   0xa   :  { %s331_s21 = scalar_lea.vmem %s18_s13, 128  ;;  %s335_s22 = scalar_lea.vmem %s18_s13, 2048 }
   0xb   :  { %p332_p3 = scmp.ne.s32.totalorder %s18_s13, %s331_s21  ;;  %p336_p4 = scmp.lt.s32.totalorder %s18_s13, %s18_s13 }
   0xc   :  { %p337_p5 = scmp.lt.s32.totalorder %s335_s22, %s331_s21 }
   0xe   :  { %p338_p6 = por %p337_p5, %p336_p4 }
  0x10   :  { %p339_p7 = pnand %p338_p6, %p332_p3 }
  0x12   :  { %342 = shalt.err (!%p339_p7)
}
  0x13   :  { %s394_s23 = smov 128   ;;  %s395_s24 = smov 8  }
  0x14   :  { %23 = dma.hbm_to_vmem [thread:$0]  %s483_s0, 128, %s18_s13, [#allocation4], %s394_s23, %s394_s23, %s395_s24  }
  0x15   :  { %s396_s27 = smov [#allocation6]   ;;  %s343_s4 = scalar_lea.hbm %s484_s1, 128 }
  0x16   :  { %s30_s28 = sshll.u32 %s396_s27, 4  ;;  %p344_p8 = scmp.ne.s32.totalorder %s484_s1, %s343_s4  ;;  %s31_s28 = int_to_ptr.vmem [resolvable:$true] %s30_s28 }
  0x17   :  { %p347_p9 = scmp.lt.u32.totalorder %s343_s4, %s484_s1 }
  0x19   :  { %p349_p10 = pnand %p347_p9, %p344_p8 }
  0x1b   :  { %352 = shalt.err (!%p349_p10)
}
  0x1c   :  { %s353_s9 = scalar_lea.vmem %s31_s28, 128  ;;  %p358_p12 = scmp.lt.s32.totalorder %s31_s28, %s31_s28 }
  0x1d   :  { %p354_p11 = scmp.ne.s32.totalorder %s31_s28, %s353_s9  ;;  %p359_p13 = scmp.lt.s32.totalorder %s353_s9, %s353_s9 }
  0x1f   :  { %p360_p0 = por %p359_p13, %p358_p12 }
  0x21   :  { %p361_p1 = pnand %p360_p0, %p354_p11 }
  0x23   :  { %364 = shalt.err (!%p361_p1)
}
  0x24   :  { %33 = dma.hbm_to_vmem [thread:$0]  %s484_s1, 128, %s31_s28, [#allocation7]  }
  0x25   :  { %387 = dma.done.wait [#allocation4], 2048  }
  0x26   :  { %388 = vsyncadd [#allocation4], 4294965248 }
  0x27   :  { %389 = dma.done.wait [#allocation7], 128  }
  0x28   :  { %390 = vsyncadd [#allocation7], 4294967168  ;;  %v397_v0 = vmov 0.0|0.0   ;;  %vm398_vm0 = vmmov 0   ;;  %v399_v1 = vmov 0.0   ;;  %vm60_vm1 = vcmask 261120  }
  0x29   :  { %277 = vmatprep.subr.bf16.mxu0 %v397_v0  ;;  %274 = vmatprep.mubr.msk.f32.mxu0 %vm398_vm0, %v399_v1  ;;  %v44_v2 = vld [vmem:[#allocation3] sm:$0xff]  ;;  %v45_v3 = vld [vmem:[#allocation3 + $0x8] sm:$0xff]  ;;  %vm447_vm2 = vmpackc.low %vm60_vm1, %vm60_vm1  ;;  %v182_v28 = vstv %s485_s2  ;;  %s400_s12 = smov [#allocation8]  }
  0x2a   :  { %v278_v5 = vpack.c.bf16 %v45_v3, %v44_v2  ;;  %v46_v6 = vld [vmem:[#allocation3 + $0x10] sm:$0xff]  ;;  %v47_v7 = vld [vmem:[#allocation3 + $0x18] sm:$0xff]  ;;  %v48_v9 = vld [vmem:[#allocation3 + $0x20] sm:$0xff]  ;;  %s197_s13 = sshll.u32 %s400_s12, 4  ;;  %s198_s13 = int_to_ptr.vmem [resolvable:$true] %s197_s13 }
  0x2b   :  { %v282_v8 = vpack.c.bf16 %v47_v7, %v46_v6  ;;  %v49_v10 = vld [vmem:[#allocation3 + $0x28] sm:$0xff]  ;;  %v50_v12 = vld [vmem:[#allocation3 + $0x30] sm:$0xff]  ;;  %v51_v13 = vld [vmem:[#allocation3 + $0x38] sm:$0xff]  ;;  %s365_s14 = scalar_lea.vmem %s198_s13, 16  ;;  %s369_s15 = scalar_lea.vmem %s198_s13, 32 }
  0x2c   :  { %280 = vmatpush3.bf16.xpose.msk.msra.mxu0 %vm447_vm2, %v278_v5  ;;  %v286_v11 = vpack.c.bf16 %v49_v10, %v48_v9  ;;  %v290_v14 = vpack.c.bf16 %v51_v13, %v50_v12  ;;  %v52_v15 = vld [vmem:[#allocation3 + $0x40] sm:$0xff]  ;;  %v53_v16 = vld [vmem:[#allocation3 + $0x48] sm:$0xff]  ;;  %v54_v18 = vld [vmem:[#allocation3 + $0x50] sm:$0xff]  ;;  %p366_p2 = scmp.ne.s32.totalorder %s198_s13, %s365_s14  ;;  %p370_p3 = scmp.lt.s32.totalorder %s198_s13, %s198_s13 }
  0x2d   :  { %281 = vmatprep.subr.bf16.mxu0 %v397_v0  ;;  %v294_v17 = vpack.c.bf16 %v53_v16, %v52_v15  ;;  %v55_v19 = vld [vmem:[#allocation3 + $0x58] sm:$0xff]  ;;  %v56_v21 = vld [vmem:[#allocation3 + $0x60] sm:$0xff]  ;;  %v57_v22 = vld [vmem:[#allocation3 + $0x68] sm:$0xff]  ;;  %p371_p4 = scmp.lt.s32.totalorder %s369_s15, %s365_s14 }
  0x2e   :  { %v298_v20 = vpack.c.bf16 %v55_v19, %v54_v18  ;;  %v302_v23 = vpack.c.bf16 %v57_v22, %v56_v21  ;;  %v58_v24 = vld [vmem:[#allocation3 + $0x70] sm:$0xff]  ;;  %v59_v25 = vld [vmem:[#allocation3 + $0x78] sm:$0xff]  ;;  %v42_v27 = vld [vmem:[#allocation6] sm:$0xff] }
  0x2f   :  { %v306_v26 = vpack.c.bf16 %v59_v25, %v58_v24  ;;  %p372_p5 = por %p371_p4, %p370_p3 }
  0x31   :  { %p373_p6 = pnand %p372_p5, %p366_p2 }
  0x34   :  { %284 = vmatpush3.bf16.xpose.msk.msra.mxu0 %vm447_vm2, %v282_v8 }
  0x35   :  { %285 = vmatprep.subr.bf16.mxu0 %v397_v0 }
  0x3c   :  { %288 = vmatpush3.bf16.xpose.msk.msra.mxu0 %vm447_vm2, %v286_v11 }
  0x3d   :  { %289 = vmatprep.subr.bf16.mxu0 %v397_v0 }
  0x44   :  { %292 = vmatpush3.bf16.xpose.msk.msra.mxu0 %vm447_vm2, %v290_v14 }
  0x45   :  { %293 = vmatprep.subr.bf16.mxu0 %v397_v0 }
  0x4c   :  { %296 = vmatpush3.bf16.xpose.msk.msra.mxu0 %vm447_vm2, %v294_v17 }
  0x4d   :  { %297 = vmatprep.subr.bf16.mxu0 %v397_v0 }
  0x54   :  { %300 = vmatpush3.bf16.xpose.msk.msra.mxu0 %vm447_vm2, %v298_v20 }
  0x55   :  { %301 = vmatprep.subr.bf16.mxu0 %v397_v0 }
  0x5c   :  { %304 = vmatpush3.bf16.xpose.msk.msra.mxu0 %vm447_vm2, %v302_v23 }
  0x5d   :  { %305 = vmatprep.subr.bf16.mxu0 %v397_v0 }
  0x64   :  { %308 = vmatpush3.bf16.xpose.msk.msra.mxu0 %vm447_vm2, %v306_v26 }
  0x6b   :  { %275 = vmatmul.mubr.msk.f32.vlgmr.msra.gmra.mrb[0].mxu0 %vm60_vm1, %v42_v27 }
 0x13e   :  { %v178_v29 = vpop.f32.mrb[0].mxu0 }
 0x13f   :  { %v183_v30 = vadd.f32 %v182_v28, %v178_v29  ;;  %v276_v31 = vpop.f32.mrb[1].mxu0 }
 0x141   :  { %v224_v32 = vmul.f32 -1.442695, %v183_v30 }
 0x143   :  { %317 = vpow2.f32 %v224_v32 }
 0x14d   :  { %v318_v33 = vpop.eup %317 }
 0x14e   :  { %v187_v34 = vadd.f32 1.0, %v318_v33 }
 0x150   :  { %319 = vrcp.f32 %v187_v34 }
 0x15a   :  { %v320_v35 = vpop.eup %319 }
 0x15b   :  { %190 = vst [vmem:[#allocation8] sm:$0x1] %v320_v35 }
 0x15c   :  { %376 = shalt.err (!%p373_p6)
}
 0x15d   :  { %s377_s17 = scalar_lea.hbm %s486_s3, 16 }
 0x15e   :  { %p378_p7 = scmp.ne.s32.totalorder %s486_s3, %s377_s17  ;;  %p381_p8 = scmp.lt.u32.totalorder %s377_s17, %s486_s3 }
 0x160   :  { %p383_p9 = pnand %p381_p8, %p378_p7 }
 0x162   :  { %386 = shalt.err (!%p383_p9)
}
 0x163   :  { %200 = dma.vmem_to_hbm [thread:$0]  %s198_s13, 16, %s486_s3, [#allocation5]  }
 0x164   :  { %391 = dma.done.wait [#allocation5], 16  }
 0x165   :  { %392 = vsyncadd [#allocation5], 4294967280 }
 0x166   :  { %204 = vsyncpa [#allocation4], 1 }
 0x167   :  { %205 = vsyncpa [#allocation7], 1 }
 0x168   :  { %206 = vsyncpa [#allocation5], 1 }

</bundles_post_ra>
